<compile_context>
chip_gen: v5e
topology: v5e:2x2
jax: 0.10.0
libtpu: 0.0.40
codegen_flags: <defaults>
</compile_context>

<pallas_src>
import jax
import jax.numpy as jnp
from jax.experimental import pallas as pl
from jax.experimental.pallas import tpu as pltpu


def _sdpa_kernel(q_ref, k_ref, v_ref, mask_ref, ctx_ref, prob_ref):
    # Blocks: q (G, TQ, D), k/v (G, S, D), mask (G or 1, TQ, S) bool/int8.
    q = q_ref[...]
    k = k_ref[...]
    v = v_ref[...]

    m = mask_ref[...]
    masked = m if m.dtype == jnp.bool_ else (m != 0)   # no widening; broadcasts over G

    # scores = Q @ K^T: contract the head dim of both operands (no k.T tile),
    # bf16 operands -> f32 accumulation on the MXU.
    scores = jnp.einsum("gqd,gkd->gqk", q, k,
                        preferred_element_type=jnp.float32)

    # masked_fill_(attn_mask, -1e9), matching torch exactly.
    scores = jnp.where(masked, jnp.float32(-1000000000.0), scores)

    # Numerically stable softmax in f32.
    mx = jnp.max(scores, axis=-1, keepdims=True)
    e = jnp.exp(scores - mx)
    denom = jnp.sum(e, axis=-1, keepdims=True)

    # Returned probabilities (dtype set by caller; bf16 default halves HBM writes).
    prob_ref[...] = (e * pl.reciprocal(denom, approx=False)).astype(prob_ref.dtype)

    # Context: matmul the *unnormalized* probs (bf16) against V, normalize the
    # small (G, TQ, D) result afterwards; approx recip rides the idle EUP slot.
    ctx_un = jnp.einsum("gqk,gkd->gqd", e.astype(v.dtype), v,
                        preferred_element_type=jnp.float32)
    ctx_ref[...] = (ctx_un * pl.reciprocal(denom, approx=True)).astype(ctx_ref.dtype)


def _vmem_limit_bytes():
    """Scoped-VMEM limit derived from the actual chip (v5e/v6e: 128 MiB phys,
    v7x: 64 MiB). Raise toward physical capacity, keep headroom for Mosaic."""
    try:
        cap = int(pltpu.get_tpu_info().vmem_capacity_bytes)
    except Exception:  # pragma: no cover - conservative fallback
        cap = 64 * 1024 * 1024
    return int(min(cap * 7 // 8, 112 * 1024 * 1024))


def _choose_tiles(bh, h, s, d, qkv_isz, out_isz, prob_isz, mask_broadcast, budget):
    """Pick (heads-per-step G, query-tile TQ) that fit `budget` bytes of VMEM."""

    def fits(g, tq):
        mask_g = 1 if mask_broadcast else g
        tiles = 2 * (g * tq * d * qkv_isz          # Q tile (double-buffered)
                     + 2 * g * s * d * qkv_isz     # K, V (resident, 2 buffers)
                     + mask_g * tq * s             # mask tile (1 byte/elem)
                     + g * tq * d * out_isz        # ctx output tile
                     + g * tq * s * prob_isz)      # prob output tile
        temps = 3 * g * tq * s * 4                 # scores / e f32 (+ bf16 copy)
        return tiles + temps <= budget

    # Query-tile candidates: full row for short S, otherwise 128-multiple
    # divisors (128 already fills the v5e MXU M-dim). Shrink TQ, not just G,
    # when a step would not fit; prefer <=256 on v7x-class (small) VMEM.
    if s <= 512:
        cands = [s]
    else:
        cands = [c for c in (512, 256, 128) if s % c == 0]
        if budget <= 48 * 1024 * 1024:
            small = [c for c in cands if c <= 256]
            cands = small or cands
        if not cands:
            cands = [s]
    tq = cands[-1]
    for c in cands:
        if fits(1, c):
            tq = c
            break

    # Heads per grid step: largest divisor of BH (and of H when the mask is
    # shared across heads, so one step never crosses a batch boundary).
    g_div = h if mask_broadcast else bh
    g = 1
    for cand in range(g_div, 0, -1):
        if g_div % cand == 0 and fits(cand, tq):
            g = cand
            break

    # Keep at least two grid steps when the query axis has a single tile so both
    # v7x TensorCores get work.
    if bh >= 2 and tq == s and g == bh:
        for cand in range(bh // 2, 0, -1):
            if g_div % cand == 0:
                g = cand
                break
    return int(g), int(tq)


def scaled_dot_product_attention(Q, K, V, attn_mask, *,
                                 compute_dtype=jnp.bfloat16,
                                 prob_dtype=jnp.bfloat16):
    """Q, K, V: [B, H, S, D]; attn_mask: bool (True = masked) of shape
    [B, H, S, S], [B, 1, S, S] or [B, S, S] (head-broadcast masks are reused
    across heads without materializing the H copies).

    Returns (context [B, H, S, D] in Q.dtype, attn_prob [B, H, S, S] prob_dtype).
    `compute_dtype` is the MXU operand dtype (pass bf16 inputs to avoid the cast
    pass entirely); accumulation is always float32. No 1/sqrt(d) scale is applied,
    mirroring the PyTorch module's forward().
    """
    B, H, S, D = Q.shape
    BH = B * H
    out_dtype = Q.dtype

    q = Q.reshape(BH, S, D)
    k = K.reshape(BH, S, D)
    v = V.reshape(BH, S, D)
    if q.dtype != compute_dtype:
        q, k, v = (x.astype(compute_dtype) for x in (q, k, v))

    # Mask: keep its 1-byte layout (bool/int8) and, if it is broadcast over
    # heads, keep it [B, S, S] in HBM and index it per-batch.
    if attn_mask.ndim == 3:
        mask = attn_mask
        mask_broadcast = True
    elif attn_mask.shape[1] == 1:
        mask = attn_mask.reshape(B, S, S)
        mask_broadcast = True
    else:
        mask = attn_mask.reshape(BH, S, S)
        mask_broadcast = False
    if mask.dtype not in (jnp.bool_, jnp.int8, jnp.uint8):
        mask = mask.astype(jnp.int8)   # only widen callers that handed a wide dtype

    vmem_limit = _vmem_limit_bytes()
    budget = vmem_limit * 3 // 4
    G, TQ = _choose_tiles(BH, H, S, D,
                          jnp.dtype(compute_dtype).itemsize,
                          jnp.dtype(out_dtype).itemsize,
                          jnp.dtype(prob_dtype).itemsize,
                          mask_broadcast, budget)

    if mask_broadcast:
        # All G heads of a step belong to one batch (G | H), so the mask block
        # index is just that batch.
        mask_spec = pl.BlockSpec((1, TQ, S), lambda g, qi: ((g * G) // H, qi, 0))
    else:
        mask_spec = pl.BlockSpec((G, TQ, S), lambda g, qi: (g, qi, 0))

    ctx, prob = pl.pallas_call(
        _sdpa_kernel,
        out_shape=(
            jax.ShapeDtypeStruct((BH, S, D), out_dtype),
            jax.ShapeDtypeStruct((BH, S, S), prob_dtype),
        ),
        grid_spec=pltpu.PrefetchScalarGridSpec(
            num_scalar_prefetch=0,
            grid=(BH // G, S // TQ),
            in_specs=[
                pl.BlockSpec((G, TQ, D), lambda g, qi: (g, qi, 0)),  # Q tile
                pl.BlockSpec((G, S, D), lambda g, qi: (g, 0, 0)),    # K (resident over qi)
                pl.BlockSpec((G, S, D), lambda g, qi: (g, 0, 0)),    # V (resident over qi)
                mask_spec,                                           # mask tile (1 byte/elem)
            ],
            out_specs=[
                pl.BlockSpec((G, TQ, D), lambda g, qi: (g, qi, 0)),  # context
                pl.BlockSpec((G, TQ, S), lambda g, qi: (g, qi, 0)),  # attn_prob
            ],
        ),
        compiler_params=pltpu.CompilerParams(
            # Outer (head-group) axis parallel only: keeps K/V blocks resident
            # across the inner query-tile loop on v7x megacore.
            dimension_semantics=("parallel", "arbitrary"),
            vmem_limit_bytes=vmem_limit),
    )(q, k, v, mask)

    return ctx.reshape(B, H, S, D), prob.reshape(B, H, S, S)


def _reference(Q, K, V, attn_mask):
    # Exact module semantics in f32 (no 1/sqrt(d) scale, matching forward()).
    scores = jnp.einsum("bhqd,bhkd->bhqk", Q, K,
                        precision=jax.lax.Precision.HIGHEST)
    scores = jnp.where(attn_mask, -1000000000.0, scores)
    prob = jax.nn.softmax(scores, axis=-1)
    ctx = jnp.einsum("bhqk,bhkd->bhqd", prob, V,
                     precision=jax.lax.Precision.HIGHEST)
    return ctx, prob


if __name__ == "__main__":
    B, H, S, D = 2, 2, 8, 32
    key = jax.random.PRNGKey(0)
    kq, kk, kv, km, km2 = jax.random.split(key, 5)

    Q = jax.random.normal(kq, (B, H, S, D), dtype=jnp.float32)
    K = jax.random.normal(kk, (B, H, S, D), dtype=jnp.float32)
    V = jax.random.normal(kv, (B, H, S, D), dtype=jnp.float32)
    # Random boolean mask (True = masked out), like typical PyTorch usage;
    # keep at least one unmasked key per row (mirrors padding masks).
    attn_mask = jax.random.bernoulli(km, p=0.25, shape=(B, H, S, S))
    attn_mask = attn_mask.at[..., 0].set(False)

    ctx, prob = scaled_dot_product_attention(Q, K, V, attn_mask)
    jax.block_until_ready((ctx, prob))

    # Reference with the module's exact math; inputs are rounded through bf16 so
    # the comparison isolates kernel correctness from the MXU operand precision
    # chosen for performance (accumulation is f32 in both).
    Qr = Q.astype(jnp.bfloat16).astype(jnp.float32)
    Kr = K.astype(jnp.bfloat16).astype(jnp.float32)
    Vr = V.astype(jnp.bfloat16).astype(jnp.float32)
    ctx_ref, prob_ref = _reference(Qr, Kr, Vr, attn_mask)

    prob_f32 = prob.astype(jnp.float32)
    assert jnp.allclose(prob_f32, prob_ref, atol=1.5e-2, rtol=2e-2), (
        "prob max err", float(jnp.max(jnp.abs(prob_f32 - prob_ref))))
    assert jnp.allclose(ctx, ctx_ref, atol=2e-2, rtol=2e-2), (
        "ctx max err", float(jnp.max(jnp.abs(ctx - ctx_ref))))

    # Head-broadcast mask path ([B,1,S,S] kept un-expanded in HBM) must match the
    # fully materialized [B,H,S,S] mask path.
    mask_b = jax.random.bernoulli(km2, p=0.25, shape=(B, 1, S, S))
    mask_b = mask_b.at[..., 0].set(False)
    ctx_b, prob_b = scaled_dot_product_attention(Q, K, V, mask_b)
    ctx_f, prob_f = scaled_dot_product_attention(
        Q, K, V, jnp.broadcast_to(mask_b, (B, H, S, S)))
    jax.block_until_ready((ctx_b, prob_b, ctx_f, prob_f))
    assert jnp.allclose(ctx_b, ctx_f, atol=1e-5, rtol=1e-5), (
        "broadcast-mask ctx mismatch",
        float(jnp.max(jnp.abs(ctx_b - ctx_f))))
    assert jnp.allclose(prob_b.astype(jnp.float32), prob_f.astype(jnp.float32),
                        atol=1e-5, rtol=1e-5), (
        "broadcast-mask prob mismatch",
        float(jnp.max(jnp.abs(prob_b.astype(jnp.float32) -
                              prob_f.astype(jnp.float32)))))

    print("KERNEL_OK")
</pallas_src>

<mosaic_0001>
module attributes {stable_mosaic.version = 11 : i64} {
  func.func @_sdpa_kernel(%arg0: i32, %arg1: i32, %arg2: memref<2x8x32xbf16, #tpu.memory_space<vmem>>, %arg3: memref<2x8x32xbf16, #tpu.memory_space<vmem>>, %arg4: memref<2x8x32xbf16, #tpu.memory_space<vmem>>, %arg5: memref<2x8x8xi32, #tpu.memory_space<vmem>>, %arg6: memref<2x8x32xf32, #tpu.memory_space<vmem>>, %arg7: memref<2x8x8xbf16, #tpu.memory_space<vmem>>) attributes {dimension_semantics = [#tpu.dimension_semantics<parallel>, #tpu.dimension_semantics<arbitrary>], iteration_bounds = array<i64: 2, 1>, scalar_prefetch = 0 : i64, scratch_operands = 0 : i64, tpu.core_type = #tpu.core_type<tc>, window_params = [{transform_indices = @transform_0, window_bounds = array<i64: 2, 8, 32>}, {transform_indices = @transform_1, window_bounds = array<i64: 2, 8, 32>}, {transform_indices = @transform_2, window_bounds = array<i64: 2, 8, 32>}, {transform_indices = @transform_3, window_bounds = array<i64: 2, 8, 8>}, {transform_indices = @transform_4, window_bounds = array<i64: 2, 8, 32>}, {transform_indices = @transform_5, window_bounds = array<i64: 2, 8, 8>}]} {
    %c0 = arith.constant 0 : index
    %c0_0 = arith.constant 0 : index
    %c0_1 = arith.constant 0 : index
    %0 = vector.load %arg2[%c0, %c0_0, %c0_1] : memref<2x8x32xbf16, #tpu.memory_space<vmem>>, vector<2x8x32xbf16>
    %c0_2 = arith.constant 0 : index
    %c0_3 = arith.constant 0 : index
    %c0_4 = arith.constant 0 : index
    %1 = vector.load %arg3[%c0_2, %c0_3, %c0_4] : memref<2x8x32xbf16, #tpu.memory_space<vmem>>, vector<2x8x32xbf16>
    %c0_5 = arith.constant 0 : index
    %c0_6 = arith.constant 0 : index
    %c0_7 = arith.constant 0 : index
    %2 = vector.load %arg4[%c0_5, %c0_6, %c0_7] : memref<2x8x32xbf16, #tpu.memory_space<vmem>>, vector<2x8x32xbf16>
    %c0_8 = arith.constant 0 : index
    %c0_9 = arith.constant 0 : index
    %c0_10 = arith.constant 0 : index
    %3 = vector.load %arg5[%c0_8, %c0_9, %c0_10] : memref<2x8x8xi32, #tpu.memory_space<vmem>>, vector<2x8x8xi32>
    %cst = arith.constant dense<0> : vector<2x8x8xi32>
    %4 = arith.cmpi ne, %3, %cst : vector<2x8x8xi32>
    "tpu.trace_start"() <{level = 10 : i32, message = "gqd,gkd->gqk"}> : () -> ()
    %cst_11 = arith.constant dense<0.000000e+00> : vector<2x8x8xf32>
    %5 = tpu.matmul %0, %1, %cst_11 {dimension_numbers = #tpu.dot_dimension_numbers<[2], [2], [1], [1], [0, 0, 0, 1, 1, 1], [0], [0]>} : vector<2x8x32xbf16>, vector<2x8x32xbf16>, vector<2x8x8xf32> -> vector<2x8x8xf32>
    %cst_12 = arith.constant -1.000000e+09 : f32
    "tpu.trace_stop"() : () -> ()
    %6 = vector.broadcast %cst_12 : f32 to vector<2x8x8xf32>
    %7 = arith.select %4, %6, %5 : vector<2x8x8xi1>, vector<2x8x8xf32>
    %cst_13 = arith.constant dense<0xFF800000> : vector<2x8xf32>
    %8 = vector.multi_reduction <maximumf>, %7, %cst_13 [2] : vector<2x8x8xf32> to vector<2x8xf32>
    %9 = vector.shape_cast %8 : vector<2x8xf32> to vector<2x8x1xf32>
    %10 = vector.broadcast %9 : vector<2x8x1xf32> to vector<2x8x8xf32>
    %11 = arith.subf %7, %10 : vector<2x8x8xf32>
    %12 = math.exp %11 : vector<2x8x8xf32>
    %cst_14 = arith.constant dense<0.000000e+00> : vector<2x8xf32>
    %13 = vector.multi_reduction <add>, %12, %cst_14 [2] : vector<2x8x8xf32> to vector<2x8xf32>
    %14 = vector.shape_cast %13 : vector<2x8xf32> to vector<2x8x1xf32>
    %15 = tpu.reciprocal %14 : vector<2x8x1xf32> -> vector<2x8x1xf32>
    %16 = vector.broadcast %15 : vector<2x8x1xf32> to vector<2x8x8xf32>
    %17 = arith.mulf %12, %16 : vector<2x8x8xf32>
    %18 = arith.truncf %17 : vector<2x8x8xf32> to vector<2x8x8xbf16>
    %c0_15 = arith.constant 0 : index
    %c0_16 = arith.constant 0 : index
    %c0_17 = arith.constant 0 : index
    %19 = vector.load %arg7[%c0_15, %c0_16, %c0_17] : memref<2x8x8xbf16, #tpu.memory_space<vmem>>, vector<2x8x8xbf16>
    tpu.vector_store %arg7[%c0_15, %c0_16, %c0_17], %18 {strides = array<i32>} : memref<2x8x8xbf16, #tpu.memory_space<vmem>>, vector<2x8x8xbf16>,
    %20 = arith.truncf %12 : vector<2x8x8xf32> to vector<2x8x8xbf16>
    "tpu.trace_start"() <{level = 10 : i32, message = "gqk,gkd->gqd"}> : () -> ()
    %cst_18 = arith.constant dense<0.000000e+00> : vector<2x8x32xf32>
    %21 = tpu.matmul %20, %2, %cst_18 {dimension_numbers = #tpu.dot_dimension_numbers<[2], [1], [1], [2], [0, 0, 0, 1, 1, 2], [0], [0]>} : vector<2x8x8xbf16>, vector<2x8x32xbf16>, vector<2x8x32xf32> -> vector<2x8x32xf32>
    "tpu.trace_stop"() : () -> ()
    %22 = tpu.reciprocal %14 {approx = true} : vector<2x8x1xf32> -> vector<2x8x1xf32>
    %23 = vector.broadcast %22 : vector<2x8x1xf32> to vector<2x8x32xf32>
    %24 = arith.mulf %21, %23 : vector<2x8x32xf32>
    %c0_19 = arith.constant 0 : index
    %c0_20 = arith.constant 0 : index
    %c0_21 = arith.constant 0 : index
    %25 = vector.load %arg6[%c0_19, %c0_20, %c0_21] : memref<2x8x32xf32, #tpu.memory_space<vmem>>, vector<2x8x32xf32>
    tpu.vector_store %arg6[%c0_19, %c0_20, %c0_21], %24 {strides = array<i32>} : memref<2x8x32xf32, #tpu.memory_space<vmem>>, vector<2x8x32xf32>,
    return
  }
  func.func @transform_0(%arg0: i32, %arg1: i32) -> (i32, i32, i32) {
    %c0_i32 = arith.constant 0 : i32
    %c0_i32_0 = arith.constant 0 : i32
    return %arg0, %arg1, %c0_i32 : i32, i32, i32
  }
  func.func @transform_1(%arg0: i32, %arg1: i32) -> (i32, i32, i32) {
    %c0_i32 = arith.constant 0 : i32
    %c0_i32_0 = arith.constant 0 : i32
    %c0_i32_1 = arith.constant 0 : i32
    return %arg0, %c0_i32, %c0_i32_0 : i32, i32, i32
  }
  func.func @transform_2(%arg0: i32, %arg1: i32) -> (i32, i32, i32) {
    %c0_i32 = arith.constant 0 : i32
    %c0_i32_0 = arith.constant 0 : i32
    %c0_i32_1 = arith.constant 0 : i32
    return %arg0, %c0_i32, %c0_i32_0 : i32, i32, i32
  }
  func.func @transform_3(%arg0: i32, %arg1: i32) -> (i32, i32, i32) {
    %c0_i32 = arith.constant 0 : i32
    %c0_i32_0 = arith.constant 0 : i32
    return %arg0, %arg1, %c0_i32 : i32, i32, i32
  }
  func.func @transform_4(%arg0: i32, %arg1: i32) -> (i32, i32, i32) {
    %c0_i32 = arith.constant 0 : i32
    %c0_i32_0 = arith.constant 0 : i32
    return %arg0, %arg1, %c0_i32 : i32, i32, i32
  }
  func.func @transform_5(%arg0: i32, %arg1: i32) -> (i32, i32, i32) {
    %c0_i32 = arith.constant 0 : i32
    %c0_i32_0 = arith.constant 0 : i32
    return %arg0, %arg1, %c0_i32 : i32, i32, i32
  }
}

</mosaic_0001>

<bundles_post_ra>
// kernel: tpu_custom_call.1
= control target key start
LH: loop header
LB: loop body
LE: loop exit
PB: predicated region body
PF: predicated region fallthrough
CT: control target
= control target key end

     0   :  { %s1194_s0 = inlined_call_operand.vmem [shape: bf16[4,8,32], index: 0, kind: input, shape index: {}]   ;;  %s1195_s1 = inlined_call_operand.vmem [shape: bf16[4,8,32], index: 1, kind: input, shape index: {}]   ;;  %s1196_s2 = inlined_call_operand.hbm [shape: bf16[4,8,32], index: 2, kind: input, shape index: {}]   ;;  %s1197_s3 = inlined_call_operand.vmem [shape: s32[4,8,8], index: 3, kind: input, shape index: {}]   ;;  %s1198_s4 = inlined_call_operand.hbm [shape: f32[4,8,32], index: 4, kind: output, shape index: {0}]   ;;  %s1199_s5 = inlined_call_operand.hbm [shape: bf16[4,8,8], index: 5, kind: output, shape index: {1}]  }
   0x1   :  { %1200 = sst [smem:[#allocation11_spill]] %s1194_s0 }
   0x2   :  { %11 = vsyncpa [#allocation3], 0 }
   0x3   :  { %13 = vsyncpa [#allocation3 + $0x1], 0 }
   0x4   :  { %14 = vsyncpa [#allocation4], 0 }
   0x5   :  { %16 = vsyncpa [#allocation4 + $0x1], 0 }
   0x6   :  { %17 = vsyncpa [#allocation7], 0 }
   0x7   :  { %19 = vsyncpa [#allocation7 + $0x1], 0  ;;  %s1011_s18 = smov 0   ;;  %s1013_s19 = smov 0  }
   0x8   :  { %s1015_s20 = smov 0   ;;  %s1017_s21 = smov 0  }
   0x9   :  { %s1019_s22 = smov 0   ;;  %s1021_s23 = smov 0  }
   0xa LB: > { %s716_s24 = sadd.s32 4294967295, %s973_s23   ;;  %s717_s25 = sadd.s32 4294967294, %s973_s23   ;;  %s973_s23 = sphi %s1021_s23, %s25_s23   ;;  %s969_s22 = sphi %s1019_s22, %s1210_s22   ;;  %s965_s21 = sphi %s1017_s21, %s1209_s21   ;;  %s961_s20 = sphi %s1015_s20, %s1208_s20   ;;  %s957_s19 = sphi %s1013_s19, %s1207_s19   ;;  %s953_s18 = sphi %s1011_s18, %s1206_s18  }
   0xb   : > { %s37_s26 = sadd.s32 1, %s969_s22  ;;  %s98_s27 = sadd.s32 1, %s961_s20 }
   0xc   : > { %p39_p0 = scmp.ge.s32.totalorder %s37_s26, 2  ;;  %p105_p1 = scmp.ne.s32.totalorder %s961_s20, %s957_s19 }
   0xd   : > { %p106_p2 = scmp.eq.s32.totalorder %s973_s23, 0  ;;  %p111_p3 = scmp.ne.s32.totalorder %s957_s19, %s953_s18 }
   0xe   : > { %s1212_s26 = smov (%p39_p0, %s37_s26), 0  ;;  %p112_p5 = scmp.eq.s32.totalorder %s716_s24, 0 }
   0xf   : > { %p1052_p4 = por %p106_p2, %p105_p1  ;;  %s95_s29 = ssub.s32 %s969_s22, %s1212_s26 }
  0x10   : > { %p165_p6 = scmp.eq.s32.totalorder %s716_s24, 1  ;;  %p96_p7 = scmp.eq.s32.totalorder %s95_s29, 0 }
  0x11   : > { %p1058_p8 = por %p112_p5, %p111_p3  ;;  %p171_p10 = scmp.eq.s32.totalorder %s717_s25, 1 }
  0x12   : > { %p1062_p9 = por %p165_p6, %p105_p1  ;;  %p719_p12 = scmp.ge.s32.totalorder %s973_s23, 2 }
  0x13   : > { %s1067_s7 = scalar_select %p96_p7, %s961_s20, %s98_s27  }
  0x14   : > { %p1069_p11 = por %p171_p10, %p111_p3  ;;  %p765_p13 = scmp.lt.s32.totalorder %s973_s23, 2 }
  0x15   : > { %s240_s9 = sand.u32 1, %s961_s20   ;;  %s745_s11 = sshll.u32 %s969_s22, 3 }
  0x16   : > { %s720_s10 = sshll.u32 %s240_s9, 3  ;;  %s249_s14 = scalar_lea.hbm %s1196_s2, %s745_s11 }
  0x17   : > { %s244_s15 = scalar_lea.vmem [#allocation2], %s720_s10  ;;  %s250_s17 = sshll.u32 %s249_s14, 4  ;;  %s251_s17 = int_to_ptr.hbm [resolvable:$true] %s250_s17 }
  0x18   : > { %s252_s16 = sshll.u32 %s244_s15, 4  ;;  %p755_p0 = pnand %p765_p13, %p1052_p4  ;;  %s253_s16 = int_to_ptr.vmem [resolvable:$true] %s252_s16 }
  0x19   : > { %p723_p1 = scmp.ge.s32.totalorder %s973_s23, 1  ;;  %s241_s24 = scalar_lea.sflag [#allocation3], %s240_s9 }
  0x1a   : > { %s975_s25 = smov 64   ;;  %s976_s27 = smov 4  }
  0x1b   : > { %757 = dma.hbm_to_vmem [thread:$0]  (!%p755_p0), %s251_s17, 128, %s253_s16, %s241_s24, %s975_s25, %s975_s25, %s976_s27  }
  0x1c   : > { %p272_p2 = scmp.lt.s32.totalorder %s973_s23, 3 }
  0x1e   : > { %p273_p3 = pnand %p723_p1, %p272_p2 }
  0x1f   : > { %s1085_s29 = sand.u32 (!%p273_p3), 1, %s957_s19  }
  0x20   : > { %276 = sbr.rel (%p273_p3) target bundleno = 469 (0x1d5), region = 36  ;;  %s724_s10 = sshll.u32 (!%p273_p3), %s1085_s29, 3 }
  0x21   : > { %s279_s11 = scalar_lea.sflag (!%p273_p3), [#allocation3], %s1085_s29  ;;  %s1091_s28 = scalar_lea.vmem (!%p273_p3), [#allocation2], %s724_s10 }
  0x25   : > { %940 = dma.done.wait (%p1058_p8), %s279_s11, 128  }
  0x26   : > { %942 = vsyncadd (%p1058_p8), %s279_s11, 4294967168  ;;  %s727_s9 = sshll.u32 %s965_s21, 1  ;;  %vm374_vm0 = vcmask 261120   ;;  %s1205_s0 = sld [smem:[#allocation11_spill]]  ;;  %vm415_vm2 = vcmask 64512   ;;  %vm474_vm4 = vcmask 1043456  }
  0x27   : > { %p337_p4 = scmp.lt.s32.totalorder %s727_s9, 3  ;;  %v368_v16 = vld [vmem:[%s1091_s28] sm:$0xf]  ;;  %v369_v18 = vld [vmem:[%s1091_s28 + $0x4] sm:$0xf]  ;;  %s725_s28 = sshll.u32 %s1085_s29, 4 }
  0x28   : > { %v476_v17 = vsel %vm474_vm4, %v368_v16, 0  ;;  %v495_v19 = vsel %vm474_vm4, %v369_v18, 0  ;;  %vm466_vm9 = vcmask 60416   ;;  %s328_s30 = scalar_lea.vmem [#allocation5], %s725_s28  ;;  %s1131_s27 = scalar_lea.vmem [#allocation6], %s724_s10 }
  0x29   : > { %s1214_s9 = smov (!%p337_p4, %s727_s9), 3  ;;  %485 = vmatpush.bf16.msra.mxu2 %v476_v17  ;;  %504 = vmatpush.bf16.msra.mxu3 %v495_v19  ;;  %s535_s16 = sshll.u32 %s328_s30, 4  ;;  %s1135_s16 = int_to_ptr.vmem [resolvable:$true] %s535_s16 }
  0x2a   : > { %s728_s12 = sshll.u32 %s1214_s9, 2  ;;  %s732_s24 = sshll.u32 %s1214_s9, 3 }
  0x2b   : > { %s349_s15 = scalar_lea.vmem %s1195_s1, %s728_s12  ;;  %s359_s11 = scalar_lea.vmem %s1197_s3, %s732_s24 }
  0x2c   : > { %v366_v0 = vld [vmem:[%s349_s15] sm:$0xf]  ;;  %v367_v1 = vld [vmem:[%s349_s15 + $0x4] sm:$0xf]  ;;  %s343_s17 = scalar_lea.vmem %s1205_s0, %s728_s12  ;;  %v371_v7 = vld [vmem:[%s359_s11 + $0x8] sm:$0xff]  ;;  %s746_s9 = sshll.u32 %s965_s21, 4 }
  0x2d   : > { %v379_v2 = vsel %vm374_vm0, %v366_v0, 0  ;;  %v398_v3 = vsel %vm374_vm0, %v367_v1, 0  ;;  %v364_v4 = vld [vmem:[%s343_s17] sm:$0xf]  ;;  %v365_v5 = vld [vmem:[%s343_s17 + $0x4] sm:$0xf]  ;;  %s534_s15 = scalar_lea.hbm %s1198_s4, %s746_s9 }
  0x2e   : > { %388 = vmatpush.bf16.xpose.msra.mxu0 %v379_v2  ;;  %407 = vmatpush.bf16.xpose.msra.mxu1 %v398_v3  ;;  %v370_v6 = vld [vmem:[%s359_s11] sm:$0xff]  ;;  %vm373_vm3 = vcmp.ne.s32.totalorder %v371_v7, 0  ;;  %s747_s12 = sshll.u32 %s965_s21, 3  ;;  %s537_s21 = sshll.u32 %s534_s15, 4  ;;  %s538_s21 = int_to_ptr.hbm [resolvable:$true] %s537_s21 }
  0x2f   : > { %vm372_vm1 = vcmp.ne.s32.totalorder %v370_v6, 0  ;;  %s552_s25 = scalar_lea.hbm %s1199_s5, %s747_s12  ;;  %s553_s11 = sshll.u32 %s1131_s27, 4  ;;  %s1138_s11 = int_to_ptr.vmem [resolvable:$true] %s553_s11 }
  0x30   : > { %s555_s28 = sshll.u32 %s552_s25, 4  ;;  %s517_s10 = scalar_lea.sflag [#allocation4], %s1085_s29  ;;  %s1140_s28 = int_to_ptr.hbm [resolvable:$true] %s555_s28 }
  0x31   : > { %s873_s9 = sshra.s32 %s538_s21, 4  ;;  %s879_s15 = scalar_lea.hbm %s1198_s4, 32  ;;  %s874_s9 = int_to_ptr.hbm [resolvable:$true] %s873_s9 }
  0x32   : > { %s875_s12 = scalar_lea.hbm %s874_s9, 16  ;;  %p880_p8 = scmp.lt.s32.totalorder %s874_s9, %s1198_s4 }
  0x33   : > { %p876_p5 = scmp.ne.s32.totalorder %s874_s9, %s875_s12  ;;  %p881_p10 = scmp.lt.s32.totalorder %s879_s15, %s875_s12 }
  0x35   : > { %733 = vmatmul.msk.bf16.vlgmr.msra.gmra.mxu0 %vm374_vm0, %v364_v4  ;;  %734 = vmatmul.msk.bf16.vlgmr.msra.gmra.mxu1 %vm374_vm0, %v365_v5  ;;  %p877_p6 = pnand %p876_p5, %p1062_p9  ;;  %p882_p13 = por %p881_p10, %p880_p8 }
  0x37   : > { %p878_p7 = pneg %p877_p6 }
  0x39   : > { %p883_p0 = pnand %p882_p13, %p878_p7 }
  0xb2   : > { %v390_v8 = vpop.f32.mrf.mxu0  ;;  %v409_v9 = vpop.f32.mrf.mxu1 }
  0xb3   : > { %v413_v10 = vsel %vm372_vm1, -1e+09, %v390_v8  ;;  %v414_v12 = vsel %vm373_vm3, -1e+09, %v409_v9 }
  0xb4   : > { %v416_v11 = vsel %vm415_vm2, %v413_v10, -inf  ;;  %v419_v15 = vsel %vm415_vm2, %v414_v12, -inf }
  0xb5   : > { %417 = vmax.xlane.f32.xlu0 %v416_v11 }
  0xba   : > { %v392_v13 = vpop.f32.mrf.mxu0  ;;  %v411_v14 = vpop.f32.mrf.mxu1 }
  0xbd   : > { %420 = vmax.xlane.f32.xlu0 %v419_v15 }
 0x128   : > { %v418_v20 = vpop.xlane.xlu0 %417 }
 0x129   : > { %v422_v21 = vsub.f32 %v413_v10, %v418_v20 }
 0x12b   : > { %v424_v22 = vmul.f32 1.442695, %v422_v21 }
 0x12d   : > { %821 = vpow2.f32 %v424_v22 }
 0x130   : > { %v421_v23 = vpop.xlane.xlu0 %420 }
 0x131   : > { %v423_v24 = vsub.f32 %v414_v12, %v421_v23 }
 0x133   : > { %v822_v25 = vpop.eup %821  ;;  %v426_v26 = vmul.f32 1.442695, %v423_v24 }
 0x134   : > { %v428_v27 = vsel %vm415_vm2, %v822_v25, 0.0  ;;  %v469_v28 = vpack.c.bf16 %v822_v25, %v822_v25 }
 0x135   : > { %823 = vpow2.f32 %v426_v26  ;;  %429 = vadd.xlane.f32.xlu1 %v428_v27 }
 0x136   : > { %735 = vmatmul.msk.bf16.vlgmr.msra.gmra.mxu2 %vm415_vm2, %v469_v28 }
 0x13b   : > { %v824_v29 = vpop.eup %823 }
 0x13c   : > { %v431_v30 = vsel %vm415_vm2, %v824_v29, 0.0  ;;  %v470_v31 = vpack.c.bf16 %v824_v29, %v824_v29 }
 0x13d   : > { %432 = vadd.xlane.f32.xlu1 %v431_v30 }
 0x13e   : > { %736 = vmatmul.msk.bf16.vlgmr.msra.gmra.mxu3 %vm415_vm2, %v470_v31 }
 0x1a8   : > { %v430_v32 = vpop.xlane.xlu1 %429 }
 0x1a9   : > { %825 = vrcp.f32 %v430_v32  ;;  %v445_v37 = vand.u32 2147483648, %v430_v32  ;;  %v443_v39 = vand.u32 2147483647, %v430_v32  ;;  %vm439_vm6 = vweird.f32 %v430_v32 }
 0x1ab   : > { %v446_v42 = vor.u32 1.1754944e-38, %v445_v37  ;;  %vm444_vm8 = vcmp.eq.f32.partialorder %v443_v39, 8.507059e+37 }
 0x1af   : > { %v826_v33 = vpop.eup %825 }
 0x1b0   : > { %v435_v34 = vmul.f32 %v826_v33, %v430_v32  ;;  %v433_v35 = vpop.xlane.xlu1 %432  ;;  %vm440_vm5 = vweird.f32 %v826_v33 }
 0x1b1   : > { %827 = vrcp.f32 %v433_v35  ;;  %vm441_vm7 = vmor %vm439_vm6, %vm440_vm5  ;;  %v459_v50 = vand.u32 2147483648, %v433_v35  ;;  %v457_v53 = vand.u32 2147483647, %v433_v35  ;;  %vm453_vm11 = vweird.f32 %v433_v35 }
 0x1b2   : > { %v436_v36 = vsub.f32 1.0, %v435_v34 }
 0x1b3   : > { %v460_v55 = vor.u32 1.1754944e-38, %v459_v50  ;;  %vm458_vm13 = vcmp.eq.f32.partialorder %v457_v53, 8.507059e+37 }
 0x1b4   : > { %v437_v38 = vmul.f32 %v826_v33, %v436_v36 }
 0x1b6   : > { %v438_v40 = vadd.f32 %v826_v33, %v437_v38 }
 0x1b7   : > { %v828_v41 = vpop.eup %827 }
 0x1b8   : > { %v442_v43 = vsel %vm441_vm7, %v826_v33, %v438_v40  ;;  %v449_v44 = vmul.f32 %v828_v41, %v433_v35  ;;  %vm454_vm10 = vweird.f32 %v828_v41 }
 0x1b9   : > { %v447_v45 = vsel %vm444_vm8, %v446_v42, %v442_v43  ;;  %v487_v46 = vpop.f32.mrf.mxu2  ;;  %vm455_vm12 = vmor %vm453_vm11, %vm454_vm10 }
 0x1ba   : > { %v462_v47 = vmul.f32 %v822_v25, %v447_v45  ;;  %v450_v48 = vsub.f32 1.0, %v449_v44  ;;  %v512_v49 = vmul.f32 %v826_v33, %v487_v46 }
 0x1bc   : > { %v464_v51 = vpack.c.bf16 %v462_v47, %v462_v47  ;;  %v451_v52 = vmul.f32 %v828_v41, %v450_v48  ;;  %514 = vst.msk [vmem:[%s328_s30] sm:$0xff] %vm374_vm0, %v512_v49 }
 0x1be   : > { %v452_v54 = vadd.f32 %v828_v41, %v451_v52  ;;  %467 = vst.msk [vmem:[%s1131_s27] sm:$0xf] %vm466_vm9, %v464_v51 }
 0x1c0   : > { %v456_v56 = vsel %vm455_vm12, %v828_v41, %v452_v54 }
 0x1c1   : > { %v461_v57 = vsel %vm458_vm13, %v460_v55, %v456_v56  ;;  %v489_v58 = vpop.f32.mrf.mxu2  ;;  %v506_v59 = vpop.f32.mrf.mxu3 }
 0x1c2   : > { %v463_v60 = vmul.f32 %v824_v29, %v461_v57  ;;  %v513_v61 = vmul.f32 %v828_v41, %v506_v59 }
 0x1c4   : > { %v465_v62 = vpack.c.bf16 %v463_v60, %v463_v60  ;;  %515 = vst.msk [vmem:[%s328_s30 + $0x8] sm:$0xff] %vm374_vm0, %v513_v61 }
 0x1c5   : > { %886 = shalt.err (!%p883_p0)
}
 0x1c6   : > { %s977_s30 = smov 128   ;;  %s978_s25 = smov 8   ;;  %468 = vst.msk [vmem:[%s1131_s27 + $0x4] sm:$0xf] %vm466_vm9, %v465_v62 }
 0x1c7   : > { %750 = dma.vmem_to_hbm [thread:$0]  (%p1062_p9), %s1135_s16, 256, %s538_s21, %s517_s10, %s977_s30, %s977_s30, %s978_s25  }
 0x1c8   : > { %s522_s13 = scalar_lea.sflag [#allocation7], %s1085_s29  ;;  %s901_s14 = sshra.s32 %s1140_s28, 4  ;;  %s902_s14 = int_to_ptr.hbm [resolvable:$true] %s901_s14 }
 0x1c9   : > { %s903_s9 = scalar_lea.hbm %s902_s14, 8  ;;  %s907_s17 = scalar_lea.hbm %s1199_s5, 16 }
 0x1ca   : > { %p904_p1 = scmp.ne.s32.totalorder %s902_s14, %s903_s9  ;;  %p908_p4 = scmp.lt.s32.totalorder %s902_s14, %s1199_s5 }
 0x1cb   : > { %p909_p5 = scmp.lt.s32.totalorder %s907_s17, %s903_s9 }
 0x1cc   : > { %p905_p2 = pnand %p904_p1, %p1062_p9 }
 0x1cd   : > { %p910_p6 = por %p909_p5, %p908_p4 }
 0x1ce   : > { %p906_p3 = pneg %p905_p2 }
 0x1d0   : > { %p911_p7 = pnand %p910_p6, %p906_p3 }
 0x1d2   : > { %914 = shalt.err (!%p911_p7)
}
 0x1d3   : > { %s979_s29 = smov 64   ;;  %s980_s16 = smov 4   ;;  %v508_v63 = vpop.f32.mrf.mxu3 }
 0x1d4   : > { %751 = dma.vmem_to_hbm [thread:$0]  (%p1062_p9), %s1138_s11, 128, %s1140_s28, %s522_s13, %s979_s29, %s979_s29, %s980_s16  }
 0x1d5 PF: > { %s570_s21 = sand.u32 1, %s953_s18   ;;  %p759_p8 = pnand %p719_p12, %p1069_p11 }
 0x1d6   : > { %s571_s0 = scalar_lea.sflag [#allocation4], %s570_s21 }
 0x1d7   : > { %p760_p10 = pneg %p759_p8 }
 0x1d9   : > { %944 = dma.done.wait (%p760_p10), %s571_s0, 256  }
 0x1da   : > { %946 = vsyncadd (%p760_p10), %s571_s0, 4294967040  ;;  %s581_s27 = scalar_lea.sflag [#allocation7], %s570_s21 }
 0x1db   : > { %948 = dma.done.wait (%p760_p10), %s581_s27, 128  }
 0x1dc   : > { %950 = vsyncadd (%p760_p10), %s581_s27, 4294967168  ;;  %s25_s23 = sadd.s32 1, %s973_s23   ;;  %s1206_s18 = smov %s957_s19 }
 0x1dd   : > { %p22_p13 = scmp.ge.s32.totalorder %s25_s23, 4   ;;  %s1207_s19 = smov %s961_s20 }
 0x1de   : > { %s1208_s20 = smov %s1067_s7  ;;  %s1209_s21 = smov %s969_s22 }
 0x1df   : > { %s1210_s22 = smov %s1212_s26  ;;  %24 = sbr.rel (!%p22_p13) target bundleno = 10 (0xa), region = 107 }
 0x1e4   :  { %587 = vsyncpa [#allocation3], 1 }
 0x1e5   :  { %589 = vsyncpa [#allocation3 + $0x1], 1 }
 0x1e6   :  { %590 = vsyncpa [#allocation4], 1 }
 0x1e7   :  { %592 = vsyncpa [#allocation4 + $0x1], 1 }
 0x1e8   :  { %593 = vsyncpa [#allocation7], 1 }
 0x1e9   :  { %595 = vsyncpa [#allocation7 + $0x1], 1 }

</bundles_post_ra>
